<compile_context>
chip_gen: v5e
topology: v5e:2x2
jax: 0.10.0
libtpu: 0.0.40
codegen_flags: <defaults>
</compile_context>

<pallas_src>
from functools import partial

import jax
import jax.numpy as jnp
from jax.experimental import pallas as pl
from jax.experimental.pallas import tpu as pltpu

LN_EPS = 1e-5


def _layer_norm(v, g, b):
    # fp32 VPU math (kept fp32 on purpose).
    mu = jnp.mean(v, axis=-1, keepdims=True)
    var = jnp.mean((v - mu) ** 2, axis=-1, keepdims=True)
    return (v - mu) * jax.lax.rsqrt(var + LN_EPS) * g + b


# --------------------------------------------------------------- stage 1 ----
def ln_qkv_kernel(x_ref, ln1_g_ref, ln1_b_ref, wqkv_ref, bqkv_ref, qkv_ref):
    x = x_ref[0]                                                    # (tp, D) f32
    xn = _layer_norm(x, ln1_g_ref[...], ln1_b_ref[...])
    y = jnp.dot(xn.astype(jnp.bfloat16), wqkv_ref[...],
                preferred_element_type=jnp.float32) + bqkv_ref[...]
    qkv_ref[0] = y.astype(jnp.bfloat16)                             # (tp, 3*d_att) bf16


# --------------------------------------------------------------- stage 2 ----
def flash_block_kernel(
    q_ref, k_ref, v_ref, x_ref,
    wo_ref, bo_ref, ln2_g_ref, ln2_b_ref,
    w1_ref, b1_ref, w2_ref, b2_ref,
    out_ref,
    m_scr, l_scr, acc_scr, delta_scr,
    *, window_size, n_back, r,
):
    i = pl.program_id(1)                     # query-tile index
    j = pl.program_id(2)                     # kv step within the window
    n_kv = pl.num_programs(2)
    H, tq, hd = acc_scr.shape
    tk = k_ref.shape[2]
    kv_idx = i * r - n_back + j              # global kv-tile index (may be < 0)
    bf16 = jnp.bfloat16

    # ---------- init: reset online-softmax state; hoist mask delta
    @pl.when(j == 0)
    def _init():
        m_scr[...] = jnp.full_like(m_scr, -1e30)
        l_scr[...] = jnp.zeros_like(l_scr)
        acc_scr[...] = jnp.zeros_like(acc_scr)
        delta_scr[...] = (jax.lax.broadcasted_iota(jnp.int32, (tq, tk), 0)
                          - jax.lax.broadcasted_iota(jnp.int32, (tq, tk), 1))

    # ---------- one flash step over an in-window KV tile (skip tiles left of col 0)
    @pl.when(kv_idx >= 0)
    def _flash_step():
        q = q_ref[0]                          # (H, tq, hd) bf16, 1/sqrt(hd) folded in
        k = k_ref[0]                          # (H, tk, hd) bf16
        v = v_ref[0]                          # (H, tk, hd) bf16
        s = jnp.einsum("hqd,hsd->hqs", q, k,
                       preferred_element_type=jnp.float32)          # (H, tq, tk) f32

        # causal + sliding-window mask: hoisted delta + two scalar compares
        d = delta_scr[...] + (i * tq - kv_idx * tk)
        allowed = (d >= 0) & (d < window_size)
        s = jnp.where(allowed[None], s, -1e30)

        m_prev = m_scr[...]
        m_new = jnp.maximum(m_prev, jnp.max(s, axis=-1, keepdims=True))
        alpha = jnp.exp(m_prev - m_new)
        p = jnp.exp(s - m_new)
        p = jnp.where(allowed[None], p, 0.0)  # robust for fully-masked rows
        l_scr[...] = alpha * l_scr[...] + jnp.sum(p, axis=-1, keepdims=True)
        acc_scr[...] = alpha * acc_scr[...] + jnp.einsum(
            "hqs,hsd->hqd", p.astype(bf16), v, preferred_element_type=jnp.float32)
        m_scr[...] = m_new

    # ---------- finalize: out-proj (reduce over heads in the MXU), residuals, LN2+FFN
    @pl.when(j == n_kv - 1)
    def _finalize():
        o = acc_scr[...] * pl.reciprocal(l_scr[...], approx=False)   # (H, tq, hd) f32
        att = jnp.einsum("hqd,hdk->qk", o.astype(bf16), wo_ref[...],
                         preferred_element_type=jnp.float32) + bo_ref[...]
        out1 = x_ref[0] + att                                        # residual 1

        yn = _layer_norm(out1, ln2_g_ref[...], ln2_b_ref[...])
        h1 = jnp.dot(yn.astype(bf16), w1_ref[...],
                     preferred_element_type=jnp.float32) + b1_ref[...]
        h1 = jnp.maximum(h1, 0.0)                                    # ReLU (fp32)
        h2 = jnp.dot(h1.astype(bf16), w2_ref[...],
                     preferred_element_type=jnp.float32) + b2_ref[...]
        out_ref[0] = out1 + h2                                       # residual 2


# ---------------------------------------------------------------- helpers ---
def _ceil_to(x, m):
    return -(-x // m) * m


def _padded_bytes(shape, dtype):
    itemsize = jnp.dtype(dtype).itemsize
    dims = list(shape)
    if len(dims) >= 1:
        dims[-1] = _ceil_to(dims[-1], 128)
    if len(dims) >= 2:
        dims[-2] = _ceil_to(dims[-2], 8)
    n = 1
    for d in dims:
        n *= max(d, 1)
    return n * itemsize


def _vmem_capacity_bytes():
    try:
        info = pltpu.get_tpu_info()
        cap = getattr(info, "vmem_capacity_bytes", None)
        if cap:
            return int(cap)
    except Exception:
        pass
    return 64 << 20  # conservative fallback (v7x per-core VMEM)


def _vmem_limit(needed_bytes):
    cap = _vmem_capacity_bytes()
    upper = max(int(0.8 * cap), 32 << 20)
    return int(min(max(int(1.3 * needed_bytes) + (4 << 20), 32 << 20), upper))


# ---------------------------------------------------------------- wrapper ---
def transformer_block(x, params, *, num_heads, window_size, q_tile=256, kv_tile=None):
    B, T, D = x.shape
    d_att = params["wq"].shape[1]
    d_ffn = params["w1"].shape[1]
    assert d_att == D, "residual `x + att(x)` requires d_att_weigh == d_model"
    assert d_att % num_heads == 0
    H = num_heads
    hd = d_att // num_heads
    bf16 = jnp.bfloat16
    f32 = jnp.float32

    # ---- sequence tiling: decoupled q / kv tile sizes (tq a multiple of tk)
    tq = min(T, q_tile)
    assert T % tq == 0, "seq_len must be a multiple of the query tile"
    tk = min(T, kv_tile if kv_tile is not None else min(tq, 128))
    if tq % tk != 0:
        tk = tq
    assert T % tk == 0
    r = tq // tk                                  # kv tiles under the diagonal span
    n_q = T // tq
    n_back = 0 if window_size <= 1 else -(-(window_size - 1) // tk)
    n_back = min(n_back, T // tk - r)             # never need tiles left of column 0
    n_kv = n_back + r

    # ---- stage 1: LN1 + fused dense QKV projection (once per token, lane-dense N)
    scale = 1.0 / (hd ** 0.5)                     # fold softmax scale into Q proj
    w_qkv = jnp.concatenate(
        [params["wq"] * scale, params["wk"], params["wv"]], axis=-1).astype(bf16)
    b_qkv = jnp.concatenate(
        [params["bq"] * scale, params["bk"], params["bv"]], axis=-1).astype(f32)

    tp = min(T, 512)
    assert T % tp == 0
    s1_needed = (2 * (_padded_bytes((1, tp, D), f32)
                      + _padded_bytes((1, tp, 3 * d_att), bf16))
                 + 2 * (_padded_bytes((D, 3 * d_att), bf16)
                        + _padded_bytes((1, 3 * d_att), f32)
                        + 2 * _padded_bytes((1, D), f32))
                 + 2 * _padded_bytes((tp, 3 * d_att), f32))
    qkv = pl.pallas_call(
        ln_qkv_kernel,
        out_shape=jax.ShapeDtypeStruct((B, T, 3 * d_att), bf16),
        grid_spec=pltpu.PrefetchScalarGridSpec(
            num_scalar_prefetch=0,
            grid=(B, T // tp),
            in_specs=[pl.BlockSpec((1, tp, D), lambda b, t: (b, t, 0)),
                      pl.BlockSpec((1, D), lambda b, t: (0, 0)),
                      pl.BlockSpec((1, D), lambda b, t: (0, 0)),
                      pl.BlockSpec((D, 3 * d_att), lambda b, t: (0, 0)),
                      pl.BlockSpec((1, 3 * d_att), lambda b, t: (0, 0))],
            out_specs=pl.BlockSpec((1, tp, 3 * d_att), lambda b, t: (b, t, 0))),
        compiler_params=pltpu.CompilerParams(
            dimension_semantics=("parallel", "parallel"),
            vmem_limit_bytes=_vmem_limit(s1_needed)),
    )(x, params["ln1_g"], params["ln1_b"], w_qkv, b_qkv)

    # layout plumbing (cheap XLA): split heads so they form a leading batch axis
    q, k, v = jnp.split(qkv, 3, axis=-1)

    def to_heads(t):
        return t.reshape(B, T, H, hd).transpose(0, 2, 1, 3)          # (B, H, T, hd) bf16

    q_h, k_h, v_h = to_heads(q), to_heads(k), to_heads(v)

    # ---- stage 2: flash sliding-window attention + out-proj + residuals + FFN
    wo_h = params["wo"].reshape(H, hd, d_att).astype(bf16)
    weights = [wo_h, params["bo"], params["ln2_g"], params["ln2_b"],
               params["w1"].astype(bf16), params["b1"],
               params["w2"].astype(bf16), params["b2"]]

    q_spec = pl.BlockSpec((1, H, tq, hd), lambda b, i, j: (b, 0, i, 0))
    kv_map = lambda b, i, j: (b, 0, jnp.maximum(i * r - n_back + j, 0), 0)
    k_spec = pl.BlockSpec((1, H, tk, hd), kv_map)
    v_spec = pl.BlockSpec((1, H, tk, hd), kv_map)
    x_spec = pl.BlockSpec((1, tq, D), lambda b, i, j: (b, i, 0))

    scratch_shapes = [
        pltpu.VMEM((H, tq, 1), f32),       # running max
        pltpu.VMEM((H, tq, 1), f32),       # running denom
        pltpu.VMEM((H, tq, hd), f32),      # output accumulator
        pltpu.VMEM((tq, tk), jnp.int32),   # hoisted row-col delta for the mask
    ]

    # explicit VMEM budget: streamed tiles (double-buffered) + weights + scratch
    # + the big in-kernel temporaries (s/p slabs, h1, finalize temps).
    stream = 2 * (_padded_bytes((1, H, tq, hd), bf16)
                  + 2 * _padded_bytes((1, H, tk, hd), bf16)
                  + 2 * _padded_bytes((1, tq, D), f32))
    wbytes = 2 * sum(_padded_bytes(w.shape, w.dtype) for w in weights)
    scr = (2 * _padded_bytes((H, tq, 1), f32)
           + _padded_bytes((H, tq, hd), f32)
           + _padded_bytes((tq, tk), jnp.int32))
    tmp = (3 * _padded_bytes((H, tq, tk), f32)
           + _padded_bytes((H, tq, hd), f32)
           + 2 * _padded_bytes((tq, d_ffn), f32)
           + 4 * _padded_bytes((tq, D), f32))
    flash_limit = _vmem_limit(stream + wbytes + scr + tmp)

    kernel = partial(flash_block_kernel,
                     window_size=window_size, n_back=n_back, r=r)

    def build(single_buffer_weights):
        wkw = {"pipeline_mode": pl.Buffered(1)} if single_buffer_weights else {}
        in_specs = [q_spec, k_spec, v_spec, x_spec]
        for w in weights:
            in_specs.append(pl.BlockSpec(
                w.shape, (lambda b, i, j, _nd=w.ndim: (0,) * _nd), **wkw))
        return pl.pallas_call(
            kernel,
            out_shape=jax.ShapeDtypeStruct((B, T, D), f32),
            grid_spec=pltpu.PrefetchScalarGridSpec(
                num_scalar_prefetch=0,
                grid=(B, n_q, n_kv),
                in_specs=in_specs,
                out_specs=pl.BlockSpec((1, tq, D), lambda b, i, j: (b, i, 0)),
                scratch_shapes=scratch_shapes),
            compiler_params=pltpu.CompilerParams(
                dimension_semantics=("parallel", "parallel", "arbitrary"),
                vmem_limit_bytes=flash_limit))

    args = (q_h, k_h, v_h, x, *weights)
    try:
        # weights are grid-invariant -> single-buffer them (halves weight residency)
        return jax.block_until_ready(build(True)(*args))
    except Exception:
        # pipeline_mode=pl.Buffered(1) not supported here -> default double-buffering
        return jax.block_until_ready(build(False)(*args))


# -------------------------------------------------------------- reference ---
def reference_block(x, params, *, num_heads, window_size):
    """Pure-JAX fp32 reference with identical semantics (for validation)."""
    B, T, D = x.shape
    d_att = params["wq"].shape[1]
    head_dim = d_att // num_heads

    xn = _layer_norm(x, params["ln1_g"][0], params["ln1_b"][0])
    q = xn @ params["wq"] + params["bq"][0]
    k = xn @ params["wk"] + params["bk"][0]
    v = xn @ params["wv"] + params["bv"][0]
    row = jnp.arange(T)[:, None]
    col = jnp.arange(T)[None, :]
    allowed = (col <= row) & ((row - col) < window_size)

    heads = []
    for h in range(num_heads):
        lo, hi = h * head_dim, (h + 1) * head_dim
        s = jnp.einsum("btd,bsd->bts", q[..., lo:hi], k[..., lo:hi]) / (head_dim ** 0.5)
        s = jnp.where(allowed[None], s, -1e30)
        p = jax.nn.softmax(s, axis=-1)
        heads.append(jnp.einsum("bts,bsd->btd", p, v[..., lo:hi]))
    att = jnp.concatenate(heads, axis=-1) @ params["wo"] + params["bo"][0]
    out1 = x + att

    yn = _layer_norm(out1, params["ln2_g"][0], params["ln2_b"][0])
    h1 = jnp.maximum(yn @ params["w1"] + params["b1"][0], 0.0)
    h2 = h1 @ params["w2"] + params["b2"][0]
    return out1 + h2


def make_params(key, d_model, d_att, d_ffn):
    ks = jax.random.split(key, 8)
    scale = 0.05
    return {
        "ln1_g": jnp.ones((1, d_model), jnp.float32),
        "ln1_b": jnp.zeros((1, d_model), jnp.float32),
        "wq": scale * jax.random.normal(ks[0], (d_model, d_att), jnp.float32),
        "bq": jnp.zeros((1, d_att), jnp.float32),
        "wk": scale * jax.random.normal(ks[1], (d_model, d_att), jnp.float32),
        "bk": jnp.zeros((1, d_att), jnp.float32),
        "wv": scale * jax.random.normal(ks[2], (d_model, d_att), jnp.float32),
        "bv": jnp.zeros((1, d_att), jnp.float32),
        "wo": scale * jax.random.normal(ks[3], (d_att, d_att), jnp.float32),
        "bo": jnp.zeros((1, d_att), jnp.float32),
        "ln2_g": jnp.ones((1, d_att), jnp.float32),
        "ln2_b": jnp.zeros((1, d_att), jnp.float32),
        "w1": scale * jax.random.normal(ks[4], (d_att, d_ffn), jnp.float32),
        "b1": jnp.zeros((1, d_ffn), jnp.float32),
        "w2": scale * jax.random.normal(ks[5], (d_ffn, d_att), jnp.float32),
        "b2": jnp.zeros((1, d_att), jnp.float32),
    }


if __name__ == "__main__":
    # TransformerBlock(number_of_heads=4, d_model=32, d_att_weigh=32,
    #                  seq_len=8, d_FFN=64, dropout=0.0, window_size=4)
    configs = [
        # (heads, d_model, d_att, seq_len, d_ffn, window, batch, q_tile, kv_tile)
        (4, 32, 32, 8, 64, 4, 2, 256, None),   # toy spec shape, single tile
        (4, 32, 32, 16, 64, 4, 2, 8, 8),       # multi-tile KV streaming + left-skip
        (4, 32, 32, 16, 64, 12, 2, 16, 8),     # decoupled tq != tk (r = 2)
        (4, 32, 32, 16, 64, 16, 1, 8, 8),      # full-causal window, B*n_q >= 2
    ]
    for cfg_id, (Hh, DM, DA, T, F, W, B, QT, KT) in enumerate(configs):
        key = jax.random.PRNGKey(0)
        kx, kp = jax.random.split(key)
        x = jax.random.normal(kx, (B, T, DM), jnp.float32)
        params = make_params(kp, DM, DA, F)

        out = transformer_block(x, params, num_heads=Hh, window_size=W,
                                q_tile=QT, kv_tile=KT)
        out = jax.block_until_ready(out)

        ref = reference_block(x, params, num_heads=Hh, window_size=W)
        assert out.shape == (B, T, DM)
        max_err = float(jnp.max(jnp.abs(out - ref)))
        # bf16 MXU operands vs fp32 reference -> loose tolerance
        assert jnp.allclose(out, ref, atol=2e-2, rtol=2e-2), (
            f"cfg {cfg_id}: mismatch vs JAX reference (max abs err {max_err})")

    print("KERNEL_OK")
</pallas_src>

<mosaic_0001>
module attributes {stable_mosaic.version = 11 : i64} {
  func.func @ln_qkv_kernel(%arg0: i32, %arg1: i32, %arg2: memref<1x8x32xf32, #tpu.memory_space<vmem>>, %arg3: memref<1x32xf32, #tpu.memory_space<vmem>>, %arg4: memref<1x32xf32, #tpu.memory_space<vmem>>, %arg5: memref<32x96xbf16, #tpu.memory_space<vmem>>, %arg6: memref<1x96xf32, #tpu.memory_space<vmem>>, %arg7: memref<1x8x96xbf16, #tpu.memory_space<vmem>>) attributes {dimension_semantics = [#tpu.dimension_semantics<parallel>, #tpu.dimension_semantics<parallel>], iteration_bounds = array<i64: 2, 1>, scalar_prefetch = 0 : i64, scratch_operands = 0 : i64, tpu.core_type = #tpu.core_type<tc>, window_params = [{transform_indices = @transform_0, window_bounds = array<i64: 1, 8, 32>}, {pipeline_mode = #tpu.pipeline_mode<synchronous>, transform_indices = @transform_1, window_bounds = array<i64: 1, 32>}, {pipeline_mode = #tpu.pipeline_mode<synchronous>, transform_indices = @transform_2, window_bounds = array<i64: 1, 32>}, {pipeline_mode = #tpu.pipeline_mode<synchronous>, transform_indices = @transform_3, window_bounds = array<i64: 32, 96>}, {pipeline_mode = #tpu.pipeline_mode<synchronous>, transform_indices = @transform_4, window_bounds = array<i64: 1, 96>}, {transform_indices = @transform_5, window_bounds = array<i64: 1, 8, 96>}]} {
    %c0 = arith.constant 0 : index
    %c0_0 = arith.constant 0 : index
    %c0_1 = arith.constant 0 : index
    %0 = vector.load %arg2[%c0, %c0_0, %c0_1] : memref<1x8x32xf32, #tpu.memory_space<vmem>>, vector<1x8x32xf32>
    %1 = vector.shape_cast %0 : vector<1x8x32xf32> to vector<8x32xf32>
    %c0_2 = arith.constant 0 : index
    %c0_3 = arith.constant 0 : index
    %2 = vector.load %arg3[%c0_2, %c0_3] : memref<1x32xf32, #tpu.memory_space<vmem>>, vector<1x32xf32>
    %c0_4 = arith.constant 0 : index
    %c0_5 = arith.constant 0 : index
    %3 = vector.load %arg4[%c0_4, %c0_5] : memref<1x32xf32, #tpu.memory_space<vmem>>, vector<1x32xf32>
    %cst = arith.constant dense<0.000000e+00> : vector<8xf32>
    %4 = vector.multi_reduction <add>, %1, %cst [1] : vector<8x32xf32> to vector<8xf32>
    %5 = vector.shape_cast %4 : vector<8xf32> to vector<8x1xf32>
    %cst_6 = arith.constant 3.200000e+01 : f32
    %6 = vector.broadcast %cst_6 : f32 to vector<8x1xf32>
    %7 = arith.divf %5, %6 : vector<8x1xf32>
    %8 = vector.broadcast %7 : vector<8x1xf32> to vector<8x32xf32>
    %9 = arith.subf %1, %8 : vector<8x32xf32>
    %10 = arith.mulf %9, %9 : vector<8x32xf32>
    %cst_7 = arith.constant dense<0.000000e+00> : vector<8xf32>
    %11 = vector.multi_reduction <add>, %10, %cst_7 [1] : vector<8x32xf32> to vector<8xf32>
    %12 = vector.shape_cast %11 : vector<8xf32> to vector<8x1xf32>
    %cst_8 = arith.constant 3.200000e+01 : f32
    %13 = vector.broadcast %cst_8 : f32 to vector<8x1xf32>
    %14 = arith.divf %12, %13 : vector<8x1xf32>
    %15 = vector.broadcast %7 : vector<8x1xf32> to vector<8x32xf32>
    %16 = arith.subf %1, %15 : vector<8x32xf32>
    %cst_9 = arith.constant 9.99999974E-6 : f32
    %17 = vector.broadcast %cst_9 : f32 to vector<8x1xf32>
    %18 = arith.addf %14, %17 : vector<8x1xf32>
    %19 = math.rsqrt %18 : vector<8x1xf32>
    %20 = vector.broadcast %19 : vector<8x1xf32> to vector<8x32xf32>
    %21 = arith.mulf %16, %20 : vector<8x32xf32>
    %22 = vector.broadcast %2 : vector<1x32xf32> to vector<8x32xf32>
    %23 = arith.mulf %21, %22 : vector<8x32xf32>
    %24 = vector.broadcast %3 : vector<1x32xf32> to vector<8x32xf32>
    %25 = arith.addf %23, %24 : vector<8x32xf32>
    %26 = arith.truncf %25 : vector<8x32xf32> to vector<8x32xbf16>
    %c0_10 = arith.constant 0 : index
    %c0_11 = arith.constant 0 : index
    %27 = vector.load %arg5[%c0_10, %c0_11] : memref<32x96xbf16, #tpu.memory_space<vmem>>, vector<32x96xbf16>
    %cst_12 = arith.constant dense<0.000000e+00> : vector<8x96xf32>
    %28 = tpu.matmul %26, %27, %cst_12 {dimension_numbers = #tpu.dot_dimension_numbers<[1], [0], [0], [1], [0, 0, 1, 1], [], []>} : vector<8x32xbf16>, vector<32x96xbf16>, vector<8x96xf32> -> vector<8x96xf32>
    %c0_13 = arith.constant 0 : index
    %c0_14 = arith.constant 0 : index
    %29 = vector.load %arg6[%c0_13, %c0_14] : memref<1x96xf32, #tpu.memory_space<vmem>>, vector<1x96xf32>
    %30 = vector.broadcast %29 : vector<1x96xf32> to vector<8x96xf32>
    %31 = arith.addf %28, %30 : vector<8x96xf32>
    %32 = arith.truncf %31 : vector<8x96xf32> to vector<8x96xbf16>
    %c0_15 = arith.constant 0 : index
    %c0_16 = arith.constant 0 : index
    %c0_17 = arith.constant 0 : index
    %33 = vector.load %arg7[%c0_15, %c0_16, %c0_17] : memref<1x8x96xbf16, #tpu.memory_space<vmem>>, vector<1x8x96xbf16>
    %34 = vector.shape_cast %33 : vector<1x8x96xbf16> to vector<8x96xbf16>
    %35 = vector.shape_cast %32 : vector<8x96xbf16> to vector<1x8x96xbf16>
    tpu.vector_store %arg7[%c0_15, %c0_16, %c0_17], %35 {strides = array<i32>} : memref<1x8x96xbf16, #tpu.memory_space<vmem>>, vector<1x8x96xbf16>,
    return
  }
  func.func @transform_0(%arg0: i32, %arg1: i32) -> (i32, i32, i32) {
    %c0_i32 = arith.constant 0 : i32
    %c0_i32_0 = arith.constant 0 : i32
    return %arg0, %arg1, %c0_i32 : i32, i32, i32
  }
  func.func @transform_1(%arg0: i32, %arg1: i32) -> (i32, i32) {
    %c0_i32 = arith.constant 0 : i32
    %c0_i32_0 = arith.constant 0 : i32
    %c0_i32_1 = arith.constant 0 : i32
    return %c0_i32, %c0_i32_0 : i32, i32
  }
  func.func @transform_2(%arg0: i32, %arg1: i32) -> (i32, i32) {
    %c0_i32 = arith.constant 0 : i32
    %c0_i32_0 = arith.constant 0 : i32
    %c0_i32_1 = arith.constant 0 : i32
    return %c0_i32, %c0_i32_0 : i32, i32
  }
  func.func @transform_3(%arg0: i32, %arg1: i32) -> (i32, i32) {
    %c0_i32 = arith.constant 0 : i32
    %c0_i32_0 = arith.constant 0 : i32
    %c0_i32_1 = arith.constant 0 : i32
    return %c0_i32, %c0_i32_0 : i32, i32
  }
  func.func @transform_4(%arg0: i32, %arg1: i32) -> (i32, i32) {
    %c0_i32 = arith.constant 0 : i32
    %c0_i32_0 = arith.constant 0 : i32
    %c0_i32_1 = arith.constant 0 : i32
    return %c0_i32, %c0_i32_0 : i32, i32
  }
  func.func @transform_5(%arg0: i32, %arg1: i32) -> (i32, i32, i32) {
    %c0_i32 = arith.constant 0 : i32
    %c0_i32_0 = arith.constant 0 : i32
    return %arg0, %arg1, %c0_i32 : i32, i32, i32
  }
}

</mosaic_0001>

<bundles_post_ra>
// kernel: tpu_custom_call.1
= control target key start
LH: loop header
LB: loop body
LE: loop exit
PB: predicated region body
PF: predicated region fallthrough
CT: control target
= control target key end

     0   :  { %10 = vsyncpa [#allocation3], 0  ;;  %s978_s0 = inlined_call_operand.hbm [shape: f32[2,8,32], index: 0, kind: input, shape index: {}]   ;;  %s979_s1 = inlined_call_operand.hbm [shape: f32[1,32], index: 1, kind: input, shape index: {}]   ;;  %s980_s2 = inlined_call_operand.vmem [shape: f32[1,32], index: 2, kind: input, shape index: {}]   ;;  %s981_s3 = inlined_call_operand.hbm [shape: bf16[32,96], index: 3, kind: input, shape index: {}]   ;;  %s982_s4 = inlined_call_operand.vmem [shape: f32[1,96], index: 4, kind: input, shape index: {}]   ;;  %s983_s5 = inlined_call_operand.hbm [shape: bf16[2,8,96], index: 5, kind: output, shape index: {}]  }
   0x1   :  { %12 = vsyncpa [#allocation3 + $0x1], 0 }
   0x2   :  { %13 = vsyncpa [#allocation6], 0 }
   0x3   :  { %14 = vsyncpa [#allocation4], 0 }
   0x4   :  { %16 = vsyncpa [#allocation4 + $0x1], 0  ;;  %s822_s18 = smov 0   ;;  %s824_s19 = smov 0  }
   0x5   :  { %s826_s20 = smov 0   ;;  %s828_s21 = smov 0  }
   0x6   :  { %s830_s22 = smov 0   ;;  %s832_s23 = smov 0  }
   0x7 LB: > { %s488_s24 = sadd.s32 4294967295, %s785_s23   ;;  %s489_s25 = sadd.s32 4294967294, %s785_s23   ;;  %s785_s23 = sphi %s832_s23, %s22_s23   ;;  %s781_s22 = sphi %s830_s22, %s993_s22   ;;  %s777_s21 = sphi %s828_s21, %s992_s21   ;;  %s773_s20 = sphi %s826_s20, %s991_s20   ;;  %s769_s19 = sphi %s824_s19, %s990_s19   ;;  %s765_s18 = sphi %s822_s18, %s989_s18  }
   0x8   : > { %p56_p0 = scmp.ne.s32.totalorder %s769_s19, %s765_s18  ;;  %p858_p1 = scmp.eq.s32.totalorder %s488_s24, 0 }
   0x9   : > { %p172_p2 = scmp.eq.s32.totalorder %s489_s25, 1  ;;  %p490_p4 = scmp.ge.s32.totalorder %s785_s23, 1 }
   0xa   : > { %p864_p3 = por %p858_p1, %p56_p0  ;;  %p179_p6 = scmp.lt.s32.totalorder %s785_s23, 3 }
   0xb   : > { %p869_p5 = por %p172_p2, %p56_p0  ;;  %s191_s6 = sshll.u32 %s979_s1, 4  ;;  %s192_s6 = int_to_ptr.hbm [resolvable:$true] %s191_s6 }
   0xc   : > { %p877_p7 = pnand %p490_p4, %p179_p6  ;;  %p493_p8 = scmp.ge.s32.totalorder %s785_s23, 2 }
   0xd   : > { %s787_s8 = smov [#allocation5]   ;;  %s205_s12 = sshll.u32 %s981_s3, 4  ;;  %s206_s12 = int_to_ptr.hbm [resolvable:$true] %s205_s12 }
   0xe   : > { %p528_p9 = pneg %p877_p7  ;;  %s193_s9 = sshll.u32 %s787_s8, 4  ;;  %s194_s9 = int_to_ptr.vmem [resolvable:$true] %s193_s9 }
   0xf   : > { %s788_s13 = smov [#allocation7]   ;;  %s789_s15 = smov 64  }
  0x10   : > { %p529_p10 = pnand %p528_p9, %p858_p1  ;;  %s207_s14 = sshll.u32 %s788_s13, 4  ;;  %s208_s14 = int_to_ptr.vmem [resolvable:$true] %s207_s14 }
  0x11   : > { %s790_s16 = smov 4   ;;  %p166_p11 = scmp.eq.s32.totalorder %s488_s24, 1 }
  0x12   : > { %531 = dma.hbm_to_vmem [thread:$0]  (!%p529_p10), %s192_s6, 16, %s194_s9, [#allocation6]  }
  0x13   : > { %534 = dma.hbm_to_vmem [thread:$0]  (!%p529_p10), %s206_s12, 256, %s208_s14, [#allocation6], %s789_s15, %s789_s15, %s790_s16  }
  0x14   : > { %s34_s17 = sadd.s32 1, %s781_s22  ;;  %s43_s25 = sadd.s32 1, %s773_s20 }
  0x15   : > { %p36_p12 = scmp.ge.s32.totalorder %s34_s17, 2  ;;  %p50_p13 = scmp.ne.s32.totalorder %s773_s20, %s769_s19 }
  0x16   : > { %p51_p0 = scmp.eq.s32.totalorder %s785_s23, 0  ;;  %p545_p4 = scmp.lt.s32.totalorder %s785_s23, 2 }
  0x17   : > { %s995_s17 = smov (%p36_p12, %s34_s17), 0  ;;  %p898_p2 = por %p166_p11, %p50_p13 }
  0x18   : > { %s38_s30 = ssub.s32 %s781_s22, %s995_s17  ;;  %s224_s6 = sand.u32 1, %s773_s20  }
  0x19   : > { %p41_p6 = scmp.eq.s32.totalorder %s38_s30, 0  ;;  %p52_p9 = por %p51_p0, %p50_p13 }
  0x1a   : > { %s494_s8 = sshll.u32 %s224_s6, 3  ;;  %s495_s24 = sshll.u32 %s781_s22, 3 }
  0x1b   : > { %s908_s9 = scalar_select %p41_p6, %s773_s20, %s43_s25  }
  0x1c   : > { %s233_s12 = scalar_lea.hbm %s978_s0, %s495_s24  ;;  %s228_s14 = scalar_lea.vmem [#allocation2], %s494_s8 }
  0x1d   : > { %s235_s13 = sshll.u32 %s233_s12, 4  ;;  %s237_s15 = sshll.u32 %s228_s14, 4  ;;  %s236_s13 = int_to_ptr.hbm [resolvable:$true] %s235_s13  ;;  %s238_s15 = int_to_ptr.vmem [resolvable:$true] %s237_s15 }
  0x1e   : > { %p536_p10 = pnand %p545_p4, %p52_p9  ;;  %s225_s16 = scalar_lea.sflag [#allocation3], %s224_s6 }
  0x1f   : > { %246 = sbr.rel (%p877_p7) target bundleno = 444 (0x1bc), region = 40  ;;  %s918_s25 = sand.u32 (!%p877_p7), 1, %s769_s19  }
  0x20   : > { %538 = dma.hbm_to_vmem [thread:$0]  (!%p536_p10), %s236_s13, 128, %s238_s15, %s225_s16  }
  0x21   : > { %s497_s30 = sshll.u32 (!%p877_p7), %s918_s25, 3  ;;  %s249_s24 = scalar_lea.sflag (!%p877_p7), [#allocation3], %s918_s25 }
  0x22   : > { %s252_s10 = scalar_lea.vmem (!%p877_p7), [#allocation2], %s497_s30 }
  0x24   : > { %752 = dma.done.wait (%p864_p3), %s249_s24, 128  }
  0x25   : > { %754 = vsyncadd (%p864_p3), %s249_s24, 4294967168 }
  0x26   : > { %756 = dma.done.wait (%p858_p1), [#allocation6], 272  }
  0x27   : > { %758 = vsyncadd (%p858_p1), [#allocation6], 4294967024  ;;  %vm294_vm0 = vcmask 261120   ;;  %v291_v0 = vld [vmem:[%s252_s10] sm:$0xff]  ;;  %v791_v2 = vmov 32.0   ;;  %v514_v15 = vld [vmem:[#allocation7] sm:$0xff] }
  0x28   : > { %v295_v1 = vsel %vm294_vm0, %v291_v0, 0.0  ;;  %605 = vrcp.f32 %v791_v2  ;;  %v515_v14 = vld [vmem:[#allocation7 + $0x8] sm:$0xff]  ;;  %v602_v25 = vld [vmem:[#allocation5] ss:$0 sm:$0xff]  ;;  %s500_s7 = sshll.u32 %s918_s25, 2  ;;  %s511_s6 = sshll.u32 %s777_s21, 2 }
  0x29   : > { %296 = vadd.xlane.f32.xlu0 %v295_v1  ;;  %362 = vmatpush.bf16.msra.mxu0 %v515_v14  ;;  %v603_v28 = vld [vmem:[%s980_s2] ss:$0 sm:$0xff]  ;;  %s384_s14 = scalar_lea.hbm %s983_s5, %s511_s6  ;;  %s289_s15 = scalar_lea.vmem [#allocation8], %s500_s7  ;;  %vm370_vm5 = vcmask 781312  }
  0x2a   : > { %v604_v32 = vld [vmem:[%s982_s4] ss:$0 sm:$0xff]  ;;  %s386_s16 = sshll.u32 %s289_s15, 4  ;;  %s388_s30 = sshll.u32 %s384_s14, 4  ;;  %s387_s16 = int_to_ptr.vmem [resolvable:$true] %s386_s16  ;;  %s389_s30 = int_to_ptr.hbm [resolvable:$true] %s388_s30 }
  0x2b   : > { %s373_s21 = scalar_lea.sflag [#allocation4], %s918_s25  ;;  %s713_s24 = sshra.s32 %s389_s30, 4  ;;  %s714_s24 = int_to_ptr.hbm [resolvable:$true] %s713_s24 }
  0x2c   : > { %s715_s10 = scalar_lea.hbm %s714_s24, 4  ;;  %s719_s7 = scalar_lea.hbm %s983_s5, 8 }
  0x2d   : > { %363 = vmatpush.bf16.msra.mxu0 %v514_v15  ;;  %p716_p1 = scmp.ne.s32.totalorder %s714_s24, %s715_s10  ;;  %p720_p11 = scmp.lt.s32.totalorder %s714_s24, %s983_s5 }
  0x2e   : > { %v606_v3 = vpop.eup %605  ;;  %p721_p12 = scmp.lt.s32.totalorder %s719_s7, %s715_s10 }
  0x2f   : > { %v299_v4 = vmul.f32 32.0, %v606_v3  ;;  %vm303_vm1 = vweird.f32 %v606_v3  ;;  %p717_p3 = pnand %p716_p1, %p898_p2 }
  0x30   : > { %p722_p13 = por %p721_p12, %p720_p11 }
  0x31   : > { %v300_v5 = vsub.f32 1.0, %v299_v4  ;;  %p718_p7 = pneg %p717_p3 }
  0x33   : > { %v301_v6 = vmul.f32 %v606_v3, %v300_v5  ;;  %p723_p0 = pnand %p722_p13, %p718_p7 }
  0x35   : > { %v302_v7 = vadd.f32 %v606_v3, %v301_v6 }
  0x37   : > { %v304_v8 = vsel %vm303_vm1, %v606_v3, %v302_v7 }
  0x9c   : > { %v297_v9 = vpop.xlane.xlu0 %296 }
  0x9d   : > { %v305_v10 = vmul.f32 %v304_v8, %v297_v9 }
  0x9f   : > { %v306_v11 = vsub.f32 %v291_v0, %v305_v10 }
  0xa1   : > { %v307_v12 = vmul.f32 %v306_v11, %v306_v11 }
  0xa3   : > { %v308_v13 = vsel %vm294_vm0, %v307_v12, 0.0 }
  0xa4   : > { %309 = vadd.xlane.f32.xlu0 %v308_v13 }
 0x117   : > { %v310_v16 = vpop.xlane.xlu0 %309 }
 0x118   : > { %v311_v17 = vmul.f32 %v310_v16, %v304_v8 }
 0x11a   : > { %v312_v18 = vadd.f32 1e-05, %v311_v17 }
 0x11c   : > { %607 = vrsqrt.f32 %v312_v18  ;;  %vm319_vm3 = vweird.f32 %v312_v18 }
 0x122   : > { %v608_v19 = vpop.eup %607 }
 0x123   : > { %v314_v20 = vmul.f32 %v608_v19, %v312_v18  ;;  %vm320_vm2 = vweird.f32 %v608_v19 }
 0x124   : > { %vm321_vm4 = vmor %vm319_vm3, %vm320_vm2 }
 0x125   : > { %v315_v21 = vmul.f32 %v608_v19, %v314_v20 }
 0x127   : > { %v316_v22 = vmul.f32 0.5, %v315_v21 }
 0x129   : > { %v317_v23 = vsub.f32 1.5, %v316_v22 }
 0x12b   : > { %v318_v24 = vmul.f32 %v608_v19, %v317_v23 }
 0x12d   : > { %v322_v26 = vsel %vm321_vm4, %v608_v19, %v318_v24 }
 0x12e   : > { %v323_v27 = vmul.f32 %v322_v26, %v306_v11 }
 0x130   : > { %v327_v29 = vmul.f32 %v602_v25, %v323_v27 }
 0x132   : > { %v331_v30 = vadd.f32 %v603_v28, %v327_v29 }
 0x134   : > { %v332_v31 = vpack.c.bf16 %v331_v30, %v331_v30 }
 0x136   : > { %509 = vmatmul.msk.bf16.vlgmr.msra.gmra.mxu0 %vm294_vm0, %v332_v31 }
 0x1b3   : > { %v365_v33 = vpop.f32.mrf.mxu0 }
 0x1b4   : > { %v366_v34 = vadd.f32 %v604_v32, %v365_v33 }
 0x1b6   : > { %v369_v35 = vpack.c.bf16 %v366_v34, %v366_v34 }
 0x1b8   : > { %371 = vst.msk [vmem:[%s289_s15] sm:$0xf] %vm370_vm5, %v369_v35 }
 0x1b9   : > { %726 = shalt.err (!%p723_p0)
}
 0x1ba   : > { %526 = dma.vmem_to_hbm [thread:$0]  (%p898_p2), %s387_s16, 64, %s389_s30, %s373_s21  }
 0x1bb   : > { %v367_v36 = vpop.f32.mrf.mxu0 }
 0x1bc PF: > { %s400_s25 = sand.u32 1, %s765_s18   ;;  %p540_p4 = pnand %p493_p8, %p869_p5 }
 0x1bd   : > { %s401_s11 = scalar_lea.sflag [#allocation4], %s400_s25 }
 0x1be   : > { %p541_p6 = pneg %p540_p4 }
 0x1c0   : > { %760 = dma.done.wait (%p541_p6), %s401_s11, 64  }
 0x1c1   : > { %762 = vsyncadd (%p541_p6), %s401_s11, 4294967232  ;;  %s22_s23 = sadd.s32 1, %s785_s23   ;;  %s989_s18 = smov %s769_s19 }
 0x1c2   : > { %p19_p9 = scmp.ge.s32.totalorder %s22_s23, 4   ;;  %s990_s19 = smov %s773_s20 }
 0x1c3   : > { %s991_s20 = smov %s908_s9  ;;  %s992_s21 = smov %s781_s22 }
 0x1c4   : > { %s993_s22 = smov %s995_s17  ;;  %21 = sbr.rel (!%p19_p9) target bundleno = 7 (0x7), region = 93 }
 0x1c9   :  { %407 = vsyncpa [#allocation3], 1 }
 0x1ca   :  { %409 = vsyncpa [#allocation3 + $0x1], 1 }
 0x1cb   :  { %410 = vsyncpa [#allocation6], 1 }
 0x1cc   :  { %411 = vsyncpa [#allocation4], 1 }
 0x1cd   :  { %413 = vsyncpa [#allocation4 + $0x1], 1 }

</bundles_post_ra>
